<compile_context>
chip_gen: v7x
topology: tpu7x:2x2x1
jax: 0.10.0
libtpu: 0.0.40
codegen_flags: <defaults>
</compile_context>

<pallas_src>
import functools

import jax
import jax.numpy as jnp
from jax.experimental import pallas as pl
from jax.experimental.pallas import tpu as pltpu


def _copy_kernel(x_ref, o_ref):
    # Identical block shapes; channel selection is done entirely by the
    # BlockSpec index maps (the grid only covers the kept channels).
    o_ref[...] = x_ref[...]


def _slice_copy_kernel(n_channels, x_ref, o_ref):
    # Input block carries all C channels of this (batch, spatial-tile);
    # keep the first n_channels (static slice of the Ref).
    o_ref[...] = x_ref[:, :n_channels, :]


def _largest_aligned_divisor(n, align, cap):
    """Largest multiple of `align` that divides `n` and is <= cap (n % align == 0)."""
    best = align
    t = align
    cap = max(align, min(n, cap))
    while t <= cap:
        if n % t == 0:
            best = t
        t += align
    return best


# Total bytes allowed for the double-buffered (input + output) pipeline
# blocks.  12 MiB stays under the smallest scoped-VMEM default across
# generations (v5e: 16 MiB; v6e/v7x: 32 MiB), so no vmem_limit override is
# needed on any of them.
_VMEM_BUDGET_BYTES = 12 * 1024 * 1024
_MAX_LANES = 2048  # lane-tile cap; large tiles amortize the ~0.35us/step overhead


def truncate_channels(x, n_channels):
    """Dense equivalent of x[:, :n_channels] for a (B, C, *spatial) array."""
    if x.ndim < 2:
        raise ValueError("expected at least (batch, channels) dims")
    B, C = x.shape[0], x.shape[1]
    K = int(n_channels)
    if not 0 < K <= C:
        raise ValueError(f"n_channels={K} out of range for C={C}")
    if K == C:
        # Nothing is dropped; the slice is the identity -> no HBM round-trip.
        return x

    spatial = x.shape[2:]
    HW = 1
    for d in spatial:
        HW *= d
    dtype_bytes = jnp.dtype(x.dtype).itemsize

    # Lane-dense view: collapse spatial dims so the last axis is a (large)
    # multiple of 128 whenever possible -> unmasked, full-width vld/vst.
    x3 = jnp.reshape(x, (B, C, HW))  # metadata-only for a contiguous NCHW array

    if HW % 128 == 0:
        tile_hw = _largest_aligned_divisor(HW, 128, _MAX_LANES)
    else:
        tile_hw = HW  # full-extent last dim is always layout-legal

    if K % 8 == 0:
        # Fast path: block directly over the kept channels.  tile_c is a
        # multiple of 8 that divides K, so both the (B,C,HW) input block and
        # the (B,K,HW) output block satisfy the (8,128) layout rule, every
        # block is fully in-bounds, and only the kept channels are ever read.
        max_tc = max(8, _VMEM_BUDGET_BYTES // (4 * tile_hw * dtype_bytes))
        tile_c = 8
        t = 8
        while t <= min(K, max_tc):
            if K % t == 0:
                tile_c = t
            t += 8
        grid = (B, K // tile_c, HW // tile_hw)
        in_specs = [pl.BlockSpec((1, tile_c, tile_hw), lambda b, c, h: (b, c, h))]
        out_specs = pl.BlockSpec((1, tile_c, tile_hw), lambda b, c, h: (b, c, h))
        kernel = _copy_kernel
        bytes_accessed = 2 * B * K * HW * dtype_bytes
        dims = ("parallel", "parallel", "parallel")
    else:
        # General path (small / ragged channel counts, e.g. C=4 -> K=2): bring
        # in the full channel extent of each spatial tile (full-extent block
        # dims are always layout-legal) and statically slice the kept prefix
        # in-kernel.  Costs one extra read of the dropped channels, acceptable
        # for small C; tile_hw is shrunk if needed to stay inside the budget.
        cap_elems = max(128, _VMEM_BUDGET_BYTES // (2 * (C + K) * dtype_bytes))
        if HW % 128 == 0:
            tile_hw = _largest_aligned_divisor(HW, 128, min(cap_elems, _MAX_LANES))
        grid = (B, pl.cdiv(HW, tile_hw))
        in_specs = [pl.BlockSpec((1, C, tile_hw), lambda b, h: (b, 0, h))]
        out_specs = pl.BlockSpec((1, K, tile_hw), lambda b, h: (b, 0, h))
        kernel = functools.partial(_slice_copy_kernel, K)
        bytes_accessed = B * (C + K) * HW * dtype_bytes
        dims = ("parallel", "parallel")

    out = pl.pallas_call(
        kernel,
        out_shape=jax.ShapeDtypeStruct((B, K, HW), x.dtype),
        grid_spec=pltpu.PrefetchScalarGridSpec(
            num_scalar_prefetch=0,
            grid=grid,
            in_specs=in_specs,
            out_specs=out_specs,
        ),
        compiler_params=pltpu.CompilerParams(dimension_semantics=dims),
        cost_estimate=pl.CostEstimate(
            flops=0, transcendentals=0, bytes_accessed=bytes_accessed),
    )(x3)

    return jnp.reshape(out, (B, K) + spatial)  # metadata-only


def truncate_channels_forward(x, n_channels, layer=None):
    """TruncateChannels.forward: self.layer(x[:, :n_channels])."""
    # TODO(synk): `self.layer` is an arbitrary wrapped nn.Module with no fixed
    # Pallas equivalent; it is taken here as a user-supplied JAX callable
    # (identity in the demo) applied after the truncation kernel.
    y = truncate_channels(x, n_channels)
    return y if layer is None else layer(y)


if __name__ == "__main__":
    key = jax.random.PRNGKey(0)

    # Small NCHW input consistent with the module: truncate 4 channels -> 2.
    x = jax.random.normal(key, (2, 4, 16, 16), dtype=jnp.float32)
    n_channels = 2

    y = truncate_channels_forward(x, n_channels)  # layer = identity
    y = jax.block_until_ready(y)

    y_ref = x[:, :n_channels]
    assert y.shape == (2, n_channels, 16, 16)
    assert y.dtype == x.dtype
    assert bool(jnp.all(y == y_ref))

    # Also exercise the channel-blocked fast path (K multiple of 8).
    x2 = jax.random.normal(jax.random.PRNGKey(1), (2, 16, 16, 16), jnp.float32)
    y2 = jax.block_until_ready(truncate_channels(x2, 8))
    assert bool(jnp.all(y2 == x2[:, :8]))

    print("KERNEL_OK")
</pallas_src>

<mosaic_0001>
module attributes {stable_mosaic.version = 11 : i64} {
  func.func @_slice_copy_kernel(%arg0: i32, %arg1: i32, %arg2: memref<1x4x256xf32, #tpu.memory_space<vmem>>, %arg3: memref<1x2x256xf32, #tpu.memory_space<vmem>>) attributes {dimension_semantics = [#tpu.dimension_semantics<parallel>, #tpu.dimension_semantics<parallel>], iteration_bounds = array<i64: 2, 1>, scalar_prefetch = 0 : i64, scratch_operands = 0 : i64, tpu.core_type = #tpu.core_type<tc>, window_params = [{transform_indices = @transform_0, window_bounds = array<i64: 1, 4, 256>}, {transform_indices = @transform_1, window_bounds = array<i64: 1, 2, 256>}]} {
    %c0 = arith.constant 0 : index
    %c0_0 = arith.constant 0 : index
    %c0_1 = arith.constant 0 : index
    %0 = vector.load %arg2[%c0, %c0_0, %c0_1] : memref<1x4x256xf32, #tpu.memory_space<vmem>>, vector<1x2x256xf32>
    %c0_2 = arith.constant 0 : index
    %c0_3 = arith.constant 0 : index
    %c0_4 = arith.constant 0 : index
    %1 = vector.load %arg3[%c0_2, %c0_3, %c0_4] : memref<1x2x256xf32, #tpu.memory_space<vmem>>, vector<1x2x256xf32>
    tpu.vector_store %arg3[%c0_2, %c0_3, %c0_4], %0 {strides = array<i32>} : memref<1x2x256xf32, #tpu.memory_space<vmem>>, vector<1x2x256xf32>,
    return
  }
  func.func @transform_0(%arg0: i32, %arg1: i32) -> (i32, i32, i32) {
    %c0_i32 = arith.constant 0 : i32
    %c0_i32_0 = arith.constant 0 : i32
    return %arg0, %c0_i32, %arg1 : i32, i32, i32
  }
  func.func @transform_1(%arg0: i32, %arg1: i32) -> (i32, i32, i32) {
    %c0_i32 = arith.constant 0 : i32
    %c0_i32_0 = arith.constant 0 : i32
    return %arg0, %c0_i32, %arg1 : i32, i32, i32
  }
}

</mosaic_0001>

<bundles_post_ra>
// kernel: tpu_custom_call.1
= control target key start
LH: loop header
LB: loop body
LE: loop exit
PB: predicated region body
PF: predicated region fallthrough
CT: control target
= control target key end

     0   :  { %6 = vsyncpa [#allocation3], 0  ;;  %s644_s0 = inlined_call_operand.hbm [shape: f32[2,4,256], index: 0, kind: input, shape index: {}]   ;;  %s645_s1 = inlined_call_operand.hbm [shape: f32[2,2,256], index: 1, kind: output, shape index: {}]  }
   0x1   :  { %8 = vsyncpa [#allocation3 + $0x1], 0 }
   0x2   :  { %9 = vsyncpa [#allocation4], 0 }
   0x3   :  { %11 = vsyncpa [#allocation4 + $0x1], 0  ;;  %s471_s6 = smov 0   ;;  %s473_s7 = smov 0  }
   0x4   :  { %s475_s8 = smov 0   ;;  %s477_s9 = smov 0  }
   0x5   :  { %s479_s10 = smov 0   ;;  %s481_s11 = smov 0  }
   0x6 LB: > { %s265_s12 = sadd.s32 4294967295, %s457_s11   ;;  %s266_s13 = sadd.s32 4294967294, %s457_s11   ;;  %s457_s11 = sphi %s481_s11, %s17_s11   ;;  %s453_s10 = sphi %s479_s10, %s661_s10   ;;  %s449_s9 = sphi %s477_s9, %s660_s9   ;;  %s445_s8 = sphi %s475_s8, %s659_s8   ;;  %s441_s7 = sphi %s473_s7, %s658_s7   ;;  %s437_s6 = sphi %s471_s6, %s657_s6  }
   0x7   : > { %s29_s14 = sadd.s32 1, %s453_s10  ;;  %s38_s15 = sadd.s32 1, %s445_s8 }
   0x8   : > { %p31_p0 = scmp.ge.s32.totalorder %s29_s14, 2  ;;  %p45_p1 = scmp.ne.s32.totalorder %s445_s8, %s441_s7 }
   0x9   : > { %p46_p2 = scmp.eq.s32.totalorder %s457_s11, 0  ;;  %p51_p3 = scmp.ne.s32.totalorder %s441_s7, %s437_s6 }
   0xa   : > { %s663_s14 = smov (%p31_p0, %s29_s14), 0  ;;  %p52_p5 = scmp.eq.s32.totalorder %s265_s12, 0 }
   0xb   : > { %p512_p4 = por %p46_p2, %p45_p1  ;;  %s33_s17 = ssub.s32 %s453_s10, %s663_s14 }
   0xc   : > { %p77_p6 = scmp.eq.s32.totalorder %s265_s12, 1  ;;  %p36_p7 = scmp.eq.s32.totalorder %s33_s17, 0 }
   0xd   : > { %p518_p8 = por %p52_p5, %p51_p3  ;;  %p83_p10 = scmp.eq.s32.totalorder %s266_s13, 1 }
   0xe   : > { %p522_p9 = por %p77_p6, %p45_p1  ;;  %p295_p13 = scmp.lt.s32.totalorder %s457_s11, 2 }
   0xf   : > { %s527_s20 = scalar_select %p36_p7, %s445_s8, %s38_s15  }
  0x10   : > { %s649_s19 = scalar_select %p522_p9, 1, 0 }
  0x11   : > { %p529_p11 = por %p83_p10, %p51_p3  ;;  %s103_s22 = sand.u32 1, %s445_s8  }
  0x12   : > { %s269_s23 = sshll.u32 %s103_s22, 3  ;;  %s281_s24 = sshll.u32 %s453_s10, 7 }
  0x13   : > { %s650_s21 = scalar_select %p529_p11, 1, 0 }
  0x14   : > { %s540_s27 = scalar_lea.hbm %s644_s0, %s281_s24  ;;  %s107_s28 = scalar_lea.vmem [#allocation2], %s269_s23 }
  0x15   : > { %s117_s29 = sshll.u32 %s107_s28, 4  ;;  %p546_p0 = pnand %p295_p13, %p512_p4  ;;  %s542_s29 = int_to_ptr.vmem [resolvable:$true] %s117_s29 }
  0x16   : > { %s104_s2 = scalar_lea.sflag [#allocation3], %s103_s22  ;;  %s345_s3 = scalar_lea.hbm %s540_s27, 128 }
  0x17   : > { %p346_p3 = scmp.ne.s32.totalorder %s540_s27, %s345_s3  ;;  %p347_p5 = pneg %p546_p0 }
  0x18   : > { %s350_s12 = scalar_lea.hbm %s644_s0, 256  ;;  %p351_p4 = scmp.lt.u32.totalorder %s540_s27, %s644_s0 }
  0x19   : > { %p348_p6 = pnand %p347_p5, %p346_p3  ;;  %p352_p10 = scmp.lt.u32.totalorder %s350_s12, %s345_s3 }
  0x1a   : > { %p354_p12 = scmp.lt.u32.totalorder %s345_s3, %s540_s27 }
  0x1b   : > { %p349_p7 = pneg %p348_p6  ;;  %p353_p13 = por %p352_p10, %p351_p4 }
  0x1d   : > { %p355_p1 = por %p354_p12, %p353_p13 }
  0x1f   : > { %p356_p2 = pnand %p355_p1, %p349_p7 }
  0x21   : > { %359 = shalt.err (!%p356_p2)
}
  0x22   : > { %s360_s16 = scalar_lea.vmem %s542_s29, 128  ;;  %s459_s17 = smov [#allocation2]  }
  0x23   : > { %p361_p3 = scmp.ne.s32.totalorder %s542_s29, %s360_s16  ;;  %s365_s22 = sshll.u32 %s459_s17, 4  ;;  %s366_s22 = int_to_ptr.vmem [resolvable:$false] %s365_s22 }
  0x24   : > { %s367_s23 = scalar_lea.vmem %s366_s22, 256  ;;  %p368_p9 = scmp.lt.s32.totalorder %s542_s29, %s366_s22 }
  0x25   : > { %p363_p6 = pnand %p361_p3, %p347_p5  ;;  %p369_p4 = scmp.lt.s32.totalorder %s367_s23, %s360_s16 }
  0x27   : > { %p364_p11 = pneg %p363_p6  ;;  %p370_p10 = por %p369_p4, %p368_p9 }
  0x29   : > { %p371_p12 = pnand %p370_p10, %p364_p11 }
  0x2b   : > { %374 = shalt.err (!%p371_p12)
}
  0x2c   : > { %290 = dma.hbm_to_vmem [thread:$0]  (!%p546_p0), %s540_s27, 128, %s542_s29, %s104_s2  }
  0x2d   : > { %p652_p1 = scmp.lt.s32.totalorder %s457_s11, 3  ;;  %p653_p2 = scmp.ge.s32.totalorder %s457_s11, 1 }
  0x2f   : > { %p123_p5 = pnand %p653_p2, %p652_p1 }
  0x30   : > { %s582_s24 = sand.u32 (!%p123_p5), 1, %s441_s7  }
  0x31   : > { %126 = sbr.rel (%p123_p5) target bundleno = 83 (0x53), region = 24  ;;  %s273_s25 = sshll.u32 (!%p123_p5), %s582_s24, 3 }
  0x32   : > { %s129_s26 = scalar_lea.sflag (!%p123_p5), [#allocation3], %s582_s24  ;;  %s132_s28 = scalar_lea.vmem (!%p123_p5), [#allocation2], %s273_s25 }
  0x38   : > { %428 = dma.done.wait (%p518_p8), %s129_s26, 128  }
  0x39   : > { %430 = vsyncadd (%p518_p8), %s129_s26, 4294967168  ;;  %s274_s27 = sshll.u32 %s582_s24, 2  ;;  %s282_s2 = sshll.u32 %s449_s9, 6 }
  0x3a   : > { %s150_s29 = scalar_lea.vmem [#allocation5], %s274_s27  ;;  %s597_s5 = scalar_lea.hbm %s645_s1, %s282_s2  ;;  %v275_v0 = vld.sshfl [vmem:[%s132_s28] sm:$0xf pattern:$0x76325410] }
  0x3b   : > { %s181_s30 = sshll.u32 %s150_s29, 4  ;;  %163 = vst [vmem:[%s150_s29] sm:$0xf] %v275_v0  ;;  %s165_s18 = scalar_lea.sflag [#allocation4], %s582_s24  ;;  %s592_s30 = int_to_ptr.vmem [resolvable:$true] %s181_s30 }
  0x3c   : > { %s375_s12 = scalar_lea.vmem %s592_s30, 64  ;;  %p654_p9 = scmp.ne.s32.totalorder %s649_s19, 0 }
  0x3d   : > { %p376_p8 = scmp.ne.s32.totalorder %s592_s30, %s375_s12  ;;  %s460_s13 = smov [#allocation5]  }
  0x3e   : > { %s379_s9 = sshll.u32 %s460_s13, 4  ;;  %s380_s9 = int_to_ptr.vmem [resolvable:$false] %s379_s9 }
  0x3f   : > { %p377_p11 = pnand %p376_p8, %p654_p9  ;;  %s381_s15 = scalar_lea.vmem %s380_s9, 128 }
  0x40   : > { %p382_p7 = scmp.lt.s32.totalorder %s592_s30, %s380_s9  ;;  %p383_p13 = scmp.lt.s32.totalorder %s381_s15, %s375_s12 }
  0x41   : > { %p378_p0 = pneg %p377_p11 }
  0x42   : > { %p384_p3 = por %p383_p13, %p382_p7 }
  0x44   : > { %p385_p6 = pnand %p384_p3, %p378_p0 }
  0x46   : > { %388 = shalt.err (!%p385_p6)
}
  0x47   : > { %s389_s16 = scalar_lea.hbm %s597_s5, 64  ;;  %s393_s23 = scalar_lea.hbm %s645_s1, 128 }
  0x48   : > { %p390_p4 = scmp.ne.s32.totalorder %s597_s5, %s389_s16  ;;  %p394_p1 = scmp.lt.u32.totalorder %s597_s5, %s645_s1 }
  0x49   : > { %p395_p2 = scmp.lt.u32.totalorder %s393_s23, %s389_s16  ;;  %p397_p8 = scmp.lt.u32.totalorder %s389_s16, %s597_s5 }
  0x4a   : > { %p391_p10 = pnand %p390_p4, %p654_p9 }
  0x4b   : > { %p396_p5 = por %p395_p2, %p394_p1 }
  0x4c   : > { %p392_p12 = pneg %p391_p10 }
  0x4d   : > { %p398_p11 = por %p397_p8, %p396_p5 }
  0x4f   : > { %p399_p0 = pnand %p398_p11, %p392_p12 }
  0x51   : > { %402 = shalt.err (!%p399_p0)
}
  0x52   : > { %285 = dma.vmem_to_hbm [thread:$0]  (%p654_p9), %s592_s30, 64, %s597_s5, %s165_s18  }
  0x53 PF: > { %s193_s26 = sand.u32 1, %s437_s6   ;;  %p655_p7 = scmp.ne.s32.totalorder %s650_s21, 0 }
  0x54   : > { %p656_p13 = scmp.ge.s32.totalorder %s457_s11, 2  ;;  %s194_s28 = scalar_lea.sflag [#allocation4], %s193_s26 }
  0x56   : > { %p292_p3 = pnand %p656_p13, %p655_p7 }
  0x58   : > { %432 = dma.done.wait (!%p292_p3), %s194_s28, 64  }
  0x59   : > { %434 = vsyncadd (!%p292_p3), %s194_s28, 4294967232  ;;  %s17_s11 = sadd.s32 1, %s457_s11   ;;  %s657_s6 = smov %s441_s7 }
  0x5a   : > { %p14_p6 = scmp.ge.s32.totalorder %s17_s11, 4   ;;  %s658_s7 = smov %s445_s8 }
  0x5b   : > { %s659_s8 = smov %s527_s20  ;;  %s660_s9 = smov %s453_s10 }
  0x5c   : > { %s661_s10 = smov %s663_s14  ;;  %16 = sbr.rel (!%p14_p6) target bundleno = 6 (0x6), region = 69 }
  0x63   :  { %199 = vsyncpa [#allocation3], 1 }
  0x64   :  { %201 = vsyncpa [#allocation3 + $0x1], 1 }
  0x65   :  { %202 = vsyncpa [#allocation4], 1 }
  0x66   :  { %204 = vsyncpa [#allocation4 + $0x1], 1 }

</bundles_post_ra>
